<compile_context>
chip_gen: v6e
topology: v6e:2x2x1
jax: 0.10.0
libtpu: 0.0.40
codegen_flags: <defaults>
</compile_context>

<pallas_src>
import functools

import jax
import jax.numpy as jnp
from jax import lax
from jax.experimental import pallas as pl
from jax.experimental.pallas import tpu as pltpu


# ---------------------------------------------------------------------------
# Sizing helpers (generation-aware VMEM budgeting)
# ---------------------------------------------------------------------------
def _round_up(x, m):
    return ((x + m - 1) // m) * m


def _vmem_capacity_bytes():
    """Physical per-core VMEM, with a conservative (v7x-sized) fallback."""
    try:
        info = pltpu.get_tpu_info()
        v = getattr(info, "vmem_capacity_bytes", None)
        if v:
            return int(v)
    except Exception:
        pass
    return 64 * 1024 * 1024


def _vmem_limit(core_bytes, vmem_phys):
    """Scoped-VMEM limit from the actual block footprint plus headroom."""
    need = int(core_bytes) + (8 << 20)
    return int(min(int(vmem_phys * 0.9), max(32 << 20, need)))


def _choose_s_tile(S, C, itemsize, vmem_phys):
    """Largest lane-aligned S tile such that the double-buffered in+out blocks
    of the streaming pass stay within ~VMEM/8 (v7x ~8 MiB, v5e/v6e ~16 MiB),
    i.e. ~2-4 MiB per block.  No artificial lane cap."""
    budget = max(vmem_phys // 8, 4 << 20)
    pad_c = _round_up(C, 8)
    max_ts = budget // (4 * pad_c * itemsize)          # 2 bufs x (in + out)
    max_ts = max(128, (max_ts // 128) * 128)
    s_up = _round_up(S, 128)
    return int(min(max_ts, s_up))


# ---------------------------------------------------------------------------
# Single-pass kernel (small volumes): whole (C, S) slab resident in VMEM.
# ---------------------------------------------------------------------------
def _sqex_single_kernel(x_ref, w1t_ref, b1_ref, w2_ref, b2_ref, wsp_ref,
                        bsp_ref, o_ref):
    x = x_ref[0]                                                 # (C, S)
    # Squeeze: per-channel global max (cross-lane reduce on the XLU).
    m = jnp.max(x, axis=1, keepdims=True).astype(jnp.float32)   # (C, 1)
    # Excitation MLP (tiny, VPU/XLU; avoids an M=1 MXU matmul).
    h = jnp.sum(w1t_ref[...] * m, axis=0, keepdims=True) + b1_ref[...]   # (1, C/2)
    h = jnp.where(h > 0, h, 0.2 * h)                             # LeakyReLU(0.2)
    z = jnp.sum(w2_ref[...] * h, axis=1, keepdims=True) + b2_ref[...]    # (C, 1)
    s_ch = jax.nn.sigmoid(z)                                     # (C, 1)
    # Spatial gate: cross-channel (sublane) reduce, then sigmoid.
    lin = jnp.sum(wsp_ref[...] * x, axis=0, keepdims=True) + bsp_ref[0]  # (1, S)
    s_sp = jax.nn.sigmoid(lin)
    # Fused combine: one multiply.
    o_ref[0] = ((s_ch + s_sp) * x).astype(o_ref.dtype)


# ---------------------------------------------------------------------------
# Phase 1 (streaming path): per-channel max over S tiles (accumulator output).
# ---------------------------------------------------------------------------
def _chan_max_kernel(x_ref, m_ref, *, S, ts, total_tiles):
    p = pl.program_id(0)                 # S-split (megacore shard on v7x)
    s = pl.program_id(2)                 # tile index within the split
    # Same arithmetic as the index_map: split 0 walks tiles forward, split 1
    # walks backward from the end (overlap on odd counts is harmless for max).
    b = s + p * (total_tiles - 1 - 2 * s)
    x = x_ref[0]                                                 # (C, ts)
    # Ragged tail handled in-kernel (no wrapper-side pad): mask lanes >= S.
    col = b * ts + lax.broadcasted_iota(jnp.int32, x.shape, 1)
    xm = jnp.where(col < S, x, jnp.finfo(x.dtype).min)
    tile_max = jnp.max(xm, axis=1, keepdims=True).astype(jnp.float32)   # (C, 1)

    @pl.when(s == 0)
    def _():
        m_ref[0, 0] = tile_max

    @pl.when(s > 0)
    def _():
        m_ref[0, 0] = jnp.maximum(m_ref[0, 0], tile_max)


# ---------------------------------------------------------------------------
# Phase 2 (streaming path): spatial gate + fused combine.
# ---------------------------------------------------------------------------
def _sqex_stream_kernel(x_ref, sch_ref, wsp_ref, bsp_ref, o_ref):
    x = x_ref[0]                                                 # (C, ts)
    # Cross-channel (sublane) reduce on the VPU/XLU (MXU path dropped).
    lin = jnp.sum(wsp_ref[...] * x, axis=0, keepdims=True) + bsp_ref[0]
    s_sp = jax.nn.sigmoid(lin)                                   # (1, ts)
    # Fused combine; out-of-range lanes of the edge block are dropped by the
    # masked writeback (no padded output buffer, no wrapper-side slice).
    o_ref[0] = ((sch_ref[0] + s_sp) * x).astype(o_ref.dtype)


def _channel_gate(m, w1t, b1, w2, b2):
    """Tiny excitation MLP on (N, C) channel maxima (plain XLA: negligible)."""
    h = m @ w1t + b1                                   # (N, C//2)
    h = jnp.where(h > 0, h, 0.2 * h)                   # LeakyReLU(0.2)
    return jax.nn.sigmoid(h @ w2.T + b2[:, 0])         # (N, C)


# ---------------------------------------------------------------------------
# Wrapper
# ---------------------------------------------------------------------------
def sqex_block(x, w1t, b1, w2, b2, wsp, bsp, *, s_tile=None, single_pass=None):
    """SqExBlock forward.

    x   : (N, C, D, H, W)
    w1t : (C, C//2)  (dense_conv1 1x1x1 weight, transposed)   b1 : (1, C//2)
    w2  : (C, C//2)  (dense_conv2 1x1x1 weight as (out, in))  b2 : (C, 1)
    wsp : (C, 1)     (spatial_conv1 1x1x1 weight)             bsp: (1, 1)
    """
    N, C, D, H, W = x.shape
    S = D * H * W
    x2 = x.reshape(N, C, S)
    itemsize = x.dtype.itemsize
    vmem_phys = _vmem_capacity_bytes()

    pad_c = _round_up(C, 8)
    pad_s = _round_up(S, 128)
    slab_bytes = pad_c * pad_s * itemsize

    bsp_s = bsp.reshape(1).astype(jnp.float32)
    w1t_f = w1t.astype(jnp.float32)
    b1_f = b1.astype(jnp.float32)
    w2_f = w2.astype(jnp.float32)
    b2_f = b2.astype(jnp.float32)
    wsp_f = wsp.astype(jnp.float32)

    if single_pass is None:
        # One (C, S) slab per batch, double-buffered in+out, within ~40% VMEM.
        single_pass = 4 * slab_bytes <= int(vmem_phys * 0.4)

    if single_pass:
        C2 = w1t.shape[1]
        out2 = pl.pallas_call(
            _sqex_single_kernel,
            out_shape=jax.ShapeDtypeStruct((N, C, S), x.dtype),
            grid_spec=pltpu.PrefetchScalarGridSpec(
                num_scalar_prefetch=0,
                grid=(N,),
                in_specs=[
                    pl.BlockSpec((1, C, S), lambda n: (n, 0, 0)),     # x slab
                    pl.BlockSpec((C, C2), lambda n: (0, 0)),          # w1t
                    pl.BlockSpec((1, C2), lambda n: (0, 0)),          # b1
                    pl.BlockSpec((C, C2), lambda n: (0, 0)),          # w2
                    pl.BlockSpec((C, 1), lambda n: (0, 0)),           # b2
                    pl.BlockSpec((C, 1), lambda n: (0, 0)),           # wsp
                    pl.BlockSpec(memory_space=pltpu.MemorySpace.SMEM),  # bsp
                ],
                out_specs=pl.BlockSpec((1, C, S), lambda n: (n, 0, 0)),
            ),
            compiler_params=pltpu.CompilerParams(
                dimension_semantics=("parallel",),
                vmem_limit_bytes=_vmem_limit(8 * slab_bytes, vmem_phys)),
        )(x2, w1t_f, b1_f, w2_f, b2_f, wsp_f, bsp_s)
        return out2.reshape(N, C, D, H, W)

    # ----- two-phase streaming path (large volumes) --------------------------
    if s_tile is None:
        ts = _choose_s_tile(S, C, itemsize, vmem_phys)
    else:
        ts = max(128, (int(s_tile) // 128) * 128)      # keep lanes 128-aligned
    total_tiles = pl.cdiv(S, ts)
    n_split = 2 if total_tiles >= 2 else 1             # v7x megacore split of S
    n_s = pl.cdiv(total_tiles, n_split)
    block_bytes = pad_c * ts * itemsize

    # Phase 1: streamed per-channel max.  Split 0 walks tiles forward, split 1
    # back-to-front, so every block index stays in range.
    def _x1_map(p, n, s):
        return (n, 0, s + p * (total_tiles - 1 - 2 * s))

    part = pl.pallas_call(
        functools.partial(_chan_max_kernel, S=S, ts=ts, total_tiles=total_tiles),
        out_shape=jax.ShapeDtypeStruct((n_split, N, C, 1), jnp.float32),
        grid_spec=pltpu.PrefetchScalarGridSpec(
            num_scalar_prefetch=0,
            grid=(n_split, N, n_s),
            in_specs=[pl.BlockSpec((1, C, ts), _x1_map)],
            out_specs=pl.BlockSpec((1, 1, C, 1), lambda p, n, s: (p, n, 0, 0)),
        ),
        compiler_params=pltpu.CompilerParams(
            dimension_semantics=("parallel", "parallel", "arbitrary"),
            vmem_limit_bytes=_vmem_limit(6 * block_bytes, vmem_phys)),
    )(x2)
    m = jnp.max(part, axis=0)                           # (N, C, 1) fold splits

    # Tiny channel-gate MLP (XLA; negligible).
    s_ch = _channel_gate(m[:, :, 0], w1t_f, b1_f, w2_f, b2_f)[:, :, None]

    # Phase 2: streaming spatial gate + fused combine over lane-dense tiles.
    out2 = pl.pallas_call(
        _sqex_stream_kernel,
        out_shape=jax.ShapeDtypeStruct((N, C, S), x.dtype),
        grid_spec=pltpu.PrefetchScalarGridSpec(
            num_scalar_prefetch=0,
            grid=(N, total_tiles),
            in_specs=[
                pl.BlockSpec((1, C, ts), lambda n, s: (n, 0, s)),   # x tile
                pl.BlockSpec((1, C, 1), lambda n, s: (n, 0, 0)),    # s_ch
                pl.BlockSpec((C, 1), lambda n, s: (0, 0)),          # wsp
                pl.BlockSpec(memory_space=pltpu.MemorySpace.SMEM),  # bsp scalar
            ],
            out_specs=pl.BlockSpec((1, C, ts), lambda n, s: (n, 0, s)),
        ),
        compiler_params=pltpu.CompilerParams(
            dimension_semantics=("parallel", "parallel"),
            vmem_limit_bytes=_vmem_limit(8 * block_bytes, vmem_phys)),
    )(x2, s_ch.astype(jnp.float32), wsp_f, bsp_s)
    return out2.reshape(N, C, D, H, W)


# ---------------------------------------------------------------------------
# Reference + self-check
# ---------------------------------------------------------------------------
def reference(x, w1t, b1, w2, b2, wsp, bsp):
    """Pure-JAX reference mirroring the PyTorch SqExBlock forward."""
    N, C, D, H, W = x.shape
    xf = x.reshape(N, C, -1).astype(jnp.float32)
    m = jnp.max(xf, axis=2)                                     # (N, C)
    h = m @ w1t + b1                                            # (N, C//2)
    h = jnp.where(h > 0, h, 0.2 * h)
    s_ch = jax.nn.sigmoid(h @ w2.T + b2[:, 0])                  # (N, C)
    s_sp = jax.nn.sigmoid(
        jnp.einsum('ncs,c->ns', xf, wsp[:, 0]) + bsp[0, 0])     # (N, S)
    out = s_ch[:, :, None] * xf + s_sp[:, None, :] * xf
    return out.reshape(x.shape).astype(x.dtype)


def _run_case(key, N, C, D, H, W, *, s_tile=None, single_pass=None):
    C2 = C // 2
    ks = jax.random.split(key, 7)
    x = jax.random.normal(ks[0], (N, C, D, H, W), dtype=jnp.float32)
    w1t = 0.3 * jax.random.normal(ks[1], (C, C2), dtype=jnp.float32)
    b1 = 0.1 * jax.random.normal(ks[2], (1, C2), dtype=jnp.float32)
    w2 = 0.3 * jax.random.normal(ks[3], (C, C2), dtype=jnp.float32)
    b2 = 0.1 * jax.random.normal(ks[4], (C, 1), dtype=jnp.float32)
    wsp = 0.3 * jax.random.normal(ks[5], (C, 1), dtype=jnp.float32)
    bsp = 0.1 * jax.random.normal(ks[6], (1, 1), dtype=jnp.float32)

    out = jax.block_until_ready(
        sqex_block(x, w1t, b1, w2, b2, wsp, bsp,
                   s_tile=s_tile, single_pass=single_pass))
    ref = reference(x, w1t, b1, w2, b2, wsp, bsp)
    assert out.shape == x.shape
    assert bool(jnp.allclose(out, ref, atol=1e-4, rtol=1e-4)), (
        "mismatch vs reference (max abs err "
        f"{float(jnp.max(jnp.abs(out - ref)))})")


if __name__ == "__main__":
    key = jax.random.PRNGKey(0)
    k1, k2, k3, k4 = jax.random.split(key, 4)

    # Case 1: C=8 (sqex_1_im), auto dispatch -> fused single-pass kernel.
    _run_case(k1, N=2, C=8, D=8, H=8, W=32)
    # Case 2: C=32 (sqex_3_im), non-128-aligned S=576, fused single-pass.
    _run_case(k2, N=1, C=32, D=8, H=8, W=9)
    # Case 3: force the two-phase streaming path on case 2's shape:
    #         phase-1 S split across 2 "cores", ragged tail masked in-kernel,
    #         edge output block masked on writeback (no pad / slice).
    _run_case(k3, N=1, C=32, D=8, H=8, W=9, s_tile=512, single_pass=False)
    # Case 4: two-phase with an odd tile count (3): back-to-front split with
    #         one overlapping tile (harmless for max) plus a ragged tail.
    _run_case(k4, N=2, C=16, D=4, H=8, W=40, s_tile=512, single_pass=False)

    print("KERNEL_OK")
</pallas_src>

<mosaic_0001>
module attributes {stable_mosaic.version = 11 : i64} {
  func.func @_sqex_single_kernel(%arg0: i32, %arg1: memref<1x8x2048xf32, #tpu.memory_space<vmem>>, %arg2: memref<8x4xf32, #tpu.memory_space<vmem>>, %arg3: memref<1x4xf32, #tpu.memory_space<vmem>>, %arg4: memref<8x4xf32, #tpu.memory_space<vmem>>, %arg5: memref<8x1xf32, #tpu.memory_space<vmem>>, %arg6: memref<8x1xf32, #tpu.memory_space<vmem>>, %arg7: memref<1xf32, #tpu.memory_space<smem>>, %arg8: memref<1x8x2048xf32, #tpu.memory_space<vmem>>) attributes {dimension_semantics = [#tpu.dimension_semantics<parallel>], iteration_bounds = array<i64: 2>, scalar_prefetch = 0 : i64, scratch_operands = 0 : i64, tpu.core_type = #tpu.core_type<tc>, window_params = [{transform_indices = @transform_0, window_bounds = array<i64: 1, 8, 2048>}, {pipeline_mode = #tpu.pipeline_mode<synchronous>, transform_indices = @transform_1, window_bounds = array<i64: 8, 4>}, {pipeline_mode = #tpu.pipeline_mode<synchronous>, transform_indices = @transform_2, window_bounds = array<i64: 1, 4>}, {pipeline_mode = #tpu.pipeline_mode<synchronous>, transform_indices = @transform_3, window_bounds = array<i64: 8, 4>}, {pipeline_mode = #tpu.pipeline_mode<synchronous>, transform_indices = @transform_4, window_bounds = array<i64: 8, 1>}, {pipeline_mode = #tpu.pipeline_mode<synchronous>, transform_indices = @transform_5, window_bounds = array<i64: 8, 1>}, {transform_indices = @transform_6, window_bounds = array<i64: 1>}, {transform_indices = @transform_7, window_bounds = array<i64: 1, 8, 2048>}]} {
    %c0 = arith.constant 0 : index
    %c0_0 = arith.constant 0 : index
    %c0_1 = arith.constant 0 : index
    %0 = vector.load %arg1[%c0, %c0_0, %c0_1] : memref<1x8x2048xf32, #tpu.memory_space<vmem>>, vector<1x8x2048xf32>
    %1 = vector.shape_cast %0 : vector<1x8x2048xf32> to vector<8x2048xf32>
    %cst = arith.constant dense<0xFF800000> : vector<8xf32>
    %2 = vector.multi_reduction <maximumf>, %1, %cst [1] : vector<8x2048xf32> to vector<8xf32>
    %3 = vector.shape_cast %2 : vector<8xf32> to vector<8x1xf32>
    %c0_2 = arith.constant 0 : index
    %c0_3 = arith.constant 0 : index
    %4 = vector.load %arg2[%c0_2, %c0_3] : memref<8x4xf32, #tpu.memory_space<vmem>>, vector<8x4xf32>
    %5 = vector.broadcast %3 : vector<8x1xf32> to vector<8x4xf32>
    %6 = arith.mulf %4, %5 : vector<8x4xf32>
    %cst_4 = arith.constant dense<0.000000e+00> : vector<4xf32>
    %7 = vector.multi_reduction <add>, %6, %cst_4 [0] : vector<8x4xf32> to vector<4xf32>
    %8 = vector.shape_cast %7 : vector<4xf32> to vector<1x4xf32>
    %c0_5 = arith.constant 0 : index
    %c0_6 = arith.constant 0 : index
    %9 = vector.load %arg3[%c0_5, %c0_6] : memref<1x4xf32, #tpu.memory_space<vmem>>, vector<1x4xf32>
    %10 = arith.addf %8, %9 : vector<1x4xf32>
    %cst_7 = arith.constant 0.000000e+00 : f32
    %11 = vector.broadcast %cst_7 : f32 to vector<1x4xf32>
    %12 = arith.cmpf ogt, %10, %11 : vector<1x4xf32>
    %cst_8 = arith.constant 2.000000e-01 : f32
    %13 = vector.broadcast %cst_8 : f32 to vector<1x4xf32>
    %14 = arith.mulf %13, %10 : vector<1x4xf32>
    %15 = arith.select %12, %10, %14 : vector<1x4xi1>, vector<1x4xf32>
    %c0_9 = arith.constant 0 : index
    %c0_10 = arith.constant 0 : index
    %16 = vector.load %arg4[%c0_9, %c0_10] : memref<8x4xf32, #tpu.memory_space<vmem>>, vector<8x4xf32>
    %17 = vector.broadcast %15 : vector<1x4xf32> to vector<8x4xf32>
    %18 = arith.mulf %16, %17 : vector<8x4xf32>
    %cst_11 = arith.constant dense<0.000000e+00> : vector<8xf32>
    %19 = vector.multi_reduction <add>, %18, %cst_11 [1] : vector<8x4xf32> to vector<8xf32>
    %20 = vector.shape_cast %19 : vector<8xf32> to vector<8x1xf32>
    %c0_12 = arith.constant 0 : index
    %c0_13 = arith.constant 0 : index
    %21 = vector.load %arg5[%c0_12, %c0_13] : memref<8x1xf32, #tpu.memory_space<vmem>>, vector<8x1xf32>
    %22 = arith.addf %20, %21 : vector<8x1xf32>
    %23 = arith.negf %22 : vector<8x1xf32>
    %24 = math.exp %23 : vector<8x1xf32>
    %cst_14 = arith.constant 1.000000e+00 : f32
    %25 = vector.broadcast %cst_14 : f32 to vector<8x1xf32>
    %26 = arith.addf %25, %24 : vector<8x1xf32>
    %27 = arith.divf %25, %26 : vector<8x1xf32>
    %c0_15 = arith.constant 0 : index
    %c0_16 = arith.constant 0 : index
    %28 = vector.load %arg6[%c0_15, %c0_16] : memref<8x1xf32, #tpu.memory_space<vmem>>, vector<8x1xf32>
    %29 = vector.broadcast %28 : vector<8x1xf32> to vector<8x2048xf32>
    %30 = arith.mulf %29, %1 : vector<8x2048xf32>
    %cst_17 = arith.constant dense<0.000000e+00> : vector<2048xf32>
    %31 = vector.multi_reduction <add>, %30, %cst_17 [0] : vector<8x2048xf32> to vector<2048xf32>
    %32 = vector.shape_cast %31 : vector<2048xf32> to vector<1x2048xf32>
    %c0_18 = arith.constant 0 : index
    %33 = memref.load %arg7[%c0_18] : memref<1xf32, #tpu.memory_space<smem>>
    %34 = vector.broadcast %33 : f32 to vector<1x2048xf32>
    %35 = arith.addf %32, %34 : vector<1x2048xf32>
    %36 = arith.negf %35 : vector<1x2048xf32>
    %37 = math.exp %36 : vector<1x2048xf32>
    %cst_19 = arith.constant 1.000000e+00 : f32
    %38 = vector.broadcast %cst_19 : f32 to vector<1x2048xf32>
    %39 = arith.addf %38, %37 : vector<1x2048xf32>
    %40 = arith.divf %38, %39 : vector<1x2048xf32>
    %41 = vector.broadcast %27 : vector<8x1xf32> to vector<8x2048xf32>
    %42 = vector.broadcast %40 : vector<1x2048xf32> to vector<8x2048xf32>
    %43 = arith.addf %41, %42 : vector<8x2048xf32>
    %44 = arith.mulf %43, %1 : vector<8x2048xf32>
    %c0_20 = arith.constant 0 : index
    %c0_21 = arith.constant 0 : index
    %c0_22 = arith.constant 0 : index
    %45 = vector.load %arg8[%c0_20, %c0_21, %c0_22] : memref<1x8x2048xf32, #tpu.memory_space<vmem>>, vector<1x8x2048xf32>
    %46 = vector.shape_cast %45 : vector<1x8x2048xf32> to vector<8x2048xf32>
    %47 = vector.shape_cast %44 : vector<8x2048xf32> to vector<1x8x2048xf32>
    tpu.vector_store %arg8[%c0_20, %c0_21, %c0_22], %47 {strides = array<i32>} : memref<1x8x2048xf32, #tpu.memory_space<vmem>>, vector<1x8x2048xf32>,
    return
  }
  func.func @transform_0(%arg0: i32) -> (i32, i32, i32) {
    %c0_i32 = arith.constant 0 : i32
    %c0_i32_0 = arith.constant 0 : i32
    %c0_i32_1 = arith.constant 0 : i32
    return %arg0, %c0_i32, %c0_i32_0 : i32, i32, i32
  }
  func.func @transform_1(%arg0: i32) -> (i32, i32) {
    %c0_i32 = arith.constant 0 : i32
    %c0_i32_0 = arith.constant 0 : i32
    %c0_i32_1 = arith.constant 0 : i32
    return %c0_i32, %c0_i32_0 : i32, i32
  }
  func.func @transform_2(%arg0: i32) -> (i32, i32) {
    %c0_i32 = arith.constant 0 : i32
    %c0_i32_0 = arith.constant 0 : i32
    %c0_i32_1 = arith.constant 0 : i32
    return %c0_i32, %c0_i32_0 : i32, i32
  }
  func.func @transform_3(%arg0: i32) -> (i32, i32) {
    %c0_i32 = arith.constant 0 : i32
    %c0_i32_0 = arith.constant 0 : i32
    %c0_i32_1 = arith.constant 0 : i32
    return %c0_i32, %c0_i32_0 : i32, i32
  }
  func.func @transform_4(%arg0: i32) -> (i32, i32) {
    %c0_i32 = arith.constant 0 : i32
    %c0_i32_0 = arith.constant 0 : i32
    %c0_i32_1 = arith.constant 0 : i32
    return %c0_i32, %c0_i32_0 : i32, i32
  }
  func.func @transform_5(%arg0: i32) -> (i32, i32) {
    %c0_i32 = arith.constant 0 : i32
    %c0_i32_0 = arith.constant 0 : i32
    %c0_i32_1 = arith.constant 0 : i32
    return %c0_i32, %c0_i32_0 : i32, i32
  }
  func.func @transform_6(%arg0: i32) -> i32 {
    %c0_i32 = arith.constant 0 : i32
    %c0_i32_0 = arith.constant 0 : i32
    return %c0_i32 : i32
  }
  func.func @transform_7(%arg0: i32) -> (i32, i32, i32) {
    %c0_i32 = arith.constant 0 : i32
    %c0_i32_0 = arith.constant 0 : i32
    %c0_i32_1 = arith.constant 0 : i32
    return %arg0, %c0_i32, %c0_i32_0 : i32, i32, i32
  }
}

</mosaic_0001>

<bundles_post_ra>
// kernel: tpu_custom_call.1
= control target key start
LH: loop header
LB: loop body
LE: loop exit
PB: predicated region body
PF: predicated region fallthrough
CT: control target
= control target key end

     0   :  { %s1312_s0 = inlined_call_operand.hbm [shape: f32[2,8,2048], index: 0, kind: input, shape index: {}]   ;;  %s1313_s1 = inlined_call_operand.vmem [shape: f32[8,4], index: 1, kind: input, shape index: {}]   ;;  %s1314_s2 = inlined_call_operand.vmem [shape: f32[1,4], index: 2, kind: input, shape index: {}]   ;;  %s1315_s3 = inlined_call_operand.vmem [shape: f32[8,4], index: 3, kind: input, shape index: {}]   ;;  %s1316_s4 = inlined_call_operand.vmem [shape: f32[8,1], index: 4, kind: input, shape index: {}]   ;;  %s1317_s5 = inlined_call_operand.vmem [shape: f32[8,1], index: 5, kind: input, shape index: {}]   ;;  %s1318_s6 = inlined_call_operand.<no memory space> [shape: f32[1], index: 6, kind: input, shape index: {}]   ;;  %s1319_s7 = inlined_call_operand.hbm [shape: f32[2,8,2048], index: 7, kind: output, shape index: {}]  }
   0x1   :  { %12 = sst [smem:[#allocation2]] %s1318_s6 }
   0x2   :  { %13 = vsyncpa [#allocation4], 0 }
   0x3   :  { %15 = vsyncpa [#allocation4 + $0x1], 0 }
   0x4   :  { %16 = vsyncpa [#allocation5], 0 }
   0x5   :  { %18 = vsyncpa [#allocation5 + $0x1], 0  ;;  %s1021_s26 = smov 0   ;;  %s1023_s27 = smov 0  }
   0x6   :  { %s1025_s28 = smov 0   ;;  %s1027_s29 = smov 0  }
   0x7 LB: > { %s1042_s6 = sadd.s32 4294967295, %s973_s29   ;;  %s731_s30 = sadd.s32 4294967294, %s973_s29   ;;  %s973_s29 = sphi %s1027_s29, %s1336_s29   ;;  %s969_s28 = sphi %s1025_s28, %s1335_s28   ;;  %s965_s27 = sphi %s1023_s27, %s1334_s27   ;;  %s961_s26 = sphi %s1021_s26, %s1333_s26  }
   0x8   : > { %s1046_s8 = sadd.s32 1, %s973_s29   ;;  %s31_s9 = sadd.s32 1, %s969_s28 }
   0x9   : > { %s28_s10 = ssub.s32 %s973_s29, %s1046_s8  ;;  %p38_p0 = scmp.ne.s32.totalorder %s969_s28, %s965_s27 }
   0xa   : > { %p29_p1 = scmp.eq.s32.totalorder %s28_s10, 0  ;;  %p39_p2 = scmp.eq.s32.totalorder %s973_s29, 0 }
   0xb   : > { %p44_p3 = scmp.ne.s32.totalorder %s965_s27, %s961_s26  ;;  %p45_p4 = scmp.eq.s32.totalorder %s1042_s6, 0 }
   0xc   : > { %s1058_s11 = scalar_select %p29_p1, %s969_s28, %s31_s9  }
   0xd   : > { %p1060_p5 = por %p39_p2, %p38_p0  ;;  %p1064_p6 = por %p45_p4, %p44_p3 }
   0xe   : > { %p194_p7 = scmp.eq.s32.totalorder %s1042_s6, 1  ;;  %p200_p8 = scmp.eq.s32.totalorder %s731_s30, 1 }
   0xf   : > { %s1323_s13 = scalar_select %p1064_p6, 1, 0 }
  0x10   : > { %p776_p10 = scmp.lt.s32.totalorder %s973_s29, 2  ;;  %p1071_p11 = por %p194_p7, %p38_p0 }
  0x11   : > { %p1075_p12 = por %p200_p8, %p44_p3  ;;  %s238_s16 = sand.u32 1, %s969_s28  }
  0x12   : > { %s1324_s14 = scalar_select %p1071_p11, 1, 0 }
  0x13   : > { %s1325_s15 = scalar_select %p1075_p12, 1, 0 }
  0x14   : > { %s762_s17 = sshll.u32 %s973_s29, 11  ;;  %s734_s18 = sshll.u32 %s238_s16, 7 }
  0x15   : > { %s1084_s21 = scalar_lea.hbm %s1312_s0, %s762_s17  ;;  %s242_s22 = scalar_lea.vmem [#allocation3], %s734_s18 }
  0x16   : > { %s250_s23 = sshll.u32 %s242_s22, 4  ;;  %p1088_p13 = pnand %p776_p10, %p1060_p5  ;;  %s1092_s23 = int_to_ptr.vmem [resolvable:$true] %s250_s23 }
  0x17   : > { %s239_s25 = scalar_lea.sflag [#allocation4], %s238_s16  ;;  %s881_s30 = scalar_lea.hbm %s1084_s21, 2048 }
  0x18   : > { %p882_p2 = scmp.ne.s32.totalorder %s1084_s21, %s881_s30  ;;  %p883_p3 = pneg %p1088_p13 }
  0x19   : > { %s886_s12 = scalar_lea.hbm %s1312_s0, 4096  ;;  %p887_p5 = scmp.lt.s32.totalorder %s1084_s21, %s1312_s0 }
  0x1a   : > { %p884_p4 = pnand %p883_p3, %p882_p2  ;;  %p888_p8 = scmp.lt.s32.totalorder %s886_s12, %s881_s30 }
  0x1c   : > { %p885_p7 = pneg %p884_p4  ;;  %p889_p10 = por %p888_p8, %p887_p5 }
  0x1e   : > { %p890_p9 = pnand %p889_p10, %p885_p7 }
  0x20   : > { %893 = shalt.err (!%p890_p9)
}
  0x21   : > { %s894_s16 = scalar_lea.vmem %s1092_s23, 2048  ;;  %s975_s19 = smov [#allocation3]  }
  0x22   : > { %p895_p0 = scmp.ne.s32.totalorder %s1092_s23, %s894_s16  ;;  %s899_s20 = sshll.u32 %s975_s19, 4  ;;  %s900_s20 = int_to_ptr.vmem [resolvable:$false] %s899_s20 }
  0x23   : > { %s901_s22 = scalar_lea.vmem %s900_s20, 4096  ;;  %p902_p4 = scmp.lt.s32.totalorder %s1092_s23, %s900_s20 }
  0x24   : > { %p897_p1 = pnand %p895_p0, %p883_p3  ;;  %p903_p12 = scmp.lt.s32.totalorder %s901_s22, %s894_s16 }
  0x26   : > { %p898_p2 = pneg %p897_p1  ;;  %p904_p11 = por %p903_p12, %p902_p4 }
  0x28   : > { %p905_p6 = pnand %p904_p11, %p898_p2 }
  0x2a   : > { %908 = shalt.err (!%p905_p6)
}
  0x2b   : > { %771 = dma.hbm_to_vmem [thread:$0]  (!%p1088_p13), %s1084_s21, 2048, %s1092_s23, %s239_s25  }
  0x2c   : > { %p1327_p9 = scmp.lt.s32.totalorder %s973_s29, 3  ;;  %p1328_p7 = scmp.ge.s32.totalorder %s973_s29, 1 }
  0x2e   : > { %p256_p0 = pnand %p1328_p7, %p1327_p9 }
  0x2f   : > { %s1119_s30 = sand.u32 (!%p256_p0), 1, %s965_s27   ;;  %p1329_p6 = scmp.ne.s32.totalorder (!%p256_p0), %s1323_s13, 0 }
  0x30   : > { %259 = sbr.rel (%p256_p0) target bundleno = 553 (0x229), region = 48  ;;  %s738_s9 = sshll.u32 (!%p256_p0), %s1119_s30, 7 }
  0x31   : > { %s262_s10 = scalar_lea.sflag (!%p256_p0), [#allocation4], %s1119_s30  ;;  %s265_s24 = scalar_lea.vmem (!%p256_p0), [#allocation3], %s738_s9 }
  0x35   : > { %952 = dma.done.wait (%p1329_p6), %s262_s10, 2048  }
  0x36   : > { %954 = vsyncadd (%p1329_p6), %s262_s10, 4294965248  ;;  %v1129_v0 = vld [vmem:[%s265_s24] sm:$0xff]  ;;  %v1131_v1 = vld [vmem:[%s265_s24 + $0x8] sm:$0xff]  ;;  %v976_v32 = vmov 0   ;;  %vm331_vm0 = vcmask 31744   ;;  %v345_v40 = vlaneseq  ;;  %s479_s22 = sld [smem:[#allocation2]] }
  0x37   : > { %v1133_v2 = vld [vmem:[%s265_s24 + $0x10] sm:$0xff]  ;;  %v1135_v3 = vld [vmem:[%s265_s24 + $0x18] sm:$0xff]  ;;  %v1137_v4 = vld [vmem:[%s265_s24 + $0x20] sm:$0xff]  ;;  %811 = vset.pattern.permute.xlu1 %v976_v32  ;;  %812 = vset.pattern.permute.xlu0 %v976_v32  ;;  %s763_s10 = sshll.u32 %s1042_s6, 11  ;;  %s647_s23 = scalar_lea.sflag [#allocation5], %s1119_s30 }
  0x38   : > { %v1139_v5 = vld [vmem:[%s265_s24 + $0x28] sm:$0xff]  ;;  %v1141_v6 = vld [vmem:[%s265_s24 + $0x30] sm:$0xff]  ;;  %v1143_v7 = vld [vmem:[%s265_s24 + $0x38] sm:$0xff]  ;;  %v312_v9 = vmax.f32 %v1129_v0, %v1137_v4  ;;  %v346_v44 = vshrl.u32 %v345_v40, 7  ;;  %s1261_s21 = scalar_lea.hbm %s1319_s7, %s763_s10  ;;  %p1330_p12 = scmp.ne.s32.totalorder %s1324_s14, 0 }
  0x39   : > { %v1145_v8 = vld [vmem:[%s265_s24 + $0x40] sm:$0xff]  ;;  %v313_v10 = vmax.f32 %v1131_v1, %v1139_v5  ;;  %v1151_v11 = vld [vmem:[%s265_s24 + $0x48] sm:$0xff]  ;;  %v1153_v12 = vld [vmem:[%s265_s24 + $0x50] sm:$0xff]  ;;  %v314_v14 = vmax.f32 %v1133_v2, %v1141_v6  ;;  %v315_v15 = vmax.f32 %v1135_v3, %v1143_v7  ;;  %s977_s12 = smov [#allocation6]  }
  0x3a   : > { %v1155_v13 = vld [vmem:[%s265_s24 + $0x58] sm:$0xff]  ;;  %v1161_v16 = vld [vmem:[%s265_s24 + $0x60] sm:$0xff]  ;;  %v1163_v17 = vld [vmem:[%s265_s24 + $0x68] sm:$0xff]  ;;  %v316_v19 = vmax.f32 %v312_v9, %v1145_v8  ;;  %v347_v47 = vsub.s32 0, %v346_v44  ;;  %s913_s17 = sshll.u32 %s977_s12, 4  ;;  %s914_s17 = int_to_ptr.vmem [resolvable:$false] %s913_s17 }
  0x3b   : > { %v1165_v18 = vld [vmem:[%s265_s24 + $0x70] sm:$0xff]  ;;  %v317_v20 = vmax.f32 %v313_v10, %v1151_v11  ;;  %v1169_v21 = vld [vmem:[%s265_s24 + $0x78] sm:$0xff]  ;;  %v318_v22 = vmax.f32 %v314_v14, %v1153_v12  ;;  %v319_v23 = vmax.f32 %v315_v15, %v1155_v13  ;;  %v361_v31 = vld [vmem:[%s1317_s5] sm:$0xff]  ;;  %s1235_s24 = scalar_lea.vmem [#allocation6], %s738_s9  ;;  %s915_s18 = scalar_lea.vmem %s914_s17, 4096 }
  0x3c   : > { %v320_v24 = vmax.f32 %v316_v19, %v1161_v16  ;;  %364 = vperm.xlu1 %811, %v361_v31   ;;  %v329_v33 = vld [vmem:[%s1313_s1] sm:$0xff]  ;;  %s661_s13 = sshll.u32 %s1235_s24, 4  ;;  %s1263_s13 = int_to_ptr.vmem [resolvable:$true] %s661_s13 }
  0x3d   : > { %v321_v25 = vmax.f32 %v317_v20, %v1163_v17  ;;  %v322_v26 = vmax.f32 %v318_v22, %v1165_v18  ;;  %v323_v27 = vmax.f32 %v319_v23, %v1169_v21  ;;  %v339_v43 = vld [vmem:[%s1314_s2] sm:$0x1]  ;;  %s909_s25 = scalar_lea.vmem %s1263_s13, 2048  ;;  %p916_p3 = scmp.lt.s32.totalorder %s1263_s13, %s914_s17 }
  0x3e   : > { %v344_v50 = vld [vmem:[%s1315_s3] sm:$0xff]  ;;  %p910_p11 = scmp.ne.s32.totalorder %s1263_s13, %s909_s25  ;;  %p917_p5 = scmp.lt.s32.totalorder %s915_s18, %s909_s25 }
  0x3f   : > { %v324_v28 = vmax.f32 %v320_v24, %v321_v25  ;;  %v325_v29 = vmax.f32 %v322_v26, %v323_v27  ;;  %v353_v54 = vld [vmem:[%s1316_s4] sm:$0xff] }
  0x40   : > { %p911_p13 = pnand %p910_p11, %p1330_p12  ;;  %p918_p8 = por %p917_p5, %p916_p3 }
  0x41   : > { %v326_v30 = vmax.f32 %v324_v28, %v325_v29 }
  0x42   : > { %p912_p1 = pneg %p911_p13 }
  0x43   : > { %327 = vmax.xlane.f32.xlu0 %v326_v30 }
  0x44   : > { %p919_p10 = pnand %p918_p8, %p912_p1 }
  0xb7   : > { %v365_v61 = vpop.permute.xlu1 %364 }
  0xb8   : > { %v367_v62 = vmul.f32 %v365_v61, %v1129_v0  ;;  %v368_v63 = vmul.f32 %v365_v61, %v1131_v1  ;;  %v369_v9 = vmul.f32 %v365_v61, %v1133_v2  ;;  %v370_v10 = vmul.f32 %v365_v61, %v1135_v3 }
  0xb9   : > { %v371_v14 = vmul.f32 %v365_v61, %v1137_v4  ;;  %v372_v19 = vmul.f32 %v365_v61, %v1139_v5  ;;  %v373_v22 = vmul.f32 %v365_v61, %v1141_v6  ;;  %v374_v24 = vmul.f32 %v365_v61, %v1143_v7 }
  0xba   : > { %v383_v15 = vrot.slane %v367_v62, 4  ;;  %v389_v20 = vrot.slane %v368_v63, 4  ;;  %v395_v23 = vrot.slane %v369_v9, 4  ;;  %v401_v25 = vrot.slane %v370_v10, 4 }
  0xbb   : > { %v375_v26 = vmul.f32 %v365_v61, %v1145_v8  ;;  %v407_v28 = vrot.slane %v371_v14, 4  ;;  %v376_v29 = vmul.f32 %v365_v61, %v1151_v11  ;;  %v413_v31 = vrot.slane %v372_v19, 4 }
  0xbc   : > { %v384_v27 = vadd.f32 %v383_v15, %v367_v62  ;;  %v390_v30 = vadd.f32 %v389_v20, %v368_v63  ;;  %v377_v32 = vmul.f32 %v365_v61, %v1153_v12 }
  0xbe   : > { %v385_v40 = vrot.slane %v384_v27, 2  ;;  %v391_v44 = vrot.slane %v390_v30, 2 }
  0xcc   : > { %v328_v34 = vpop.xlane.xlu0 %327 }
  0xcd   : > { %v330_v35 = vmul.f32 %v329_v33, %v328_v34  ;;  %v396_v33 = vadd.f32 %v395_v23, %v369_v9  ;;  %v419_v34 = vrot.slane %v373_v22, 4 }
  0xcf   : > { %v332_v36 = vsel %vm331_vm0, %v330_v35, 0.0  ;;  %v378_v35 = vmul.f32 %v365_v61, %v1155_v13 }
  0xd0   : > { %v333_v37 = vrot.slane %v332_v36, 4 }
  0xd2   : > { %v334_v38 = vadd.f32 %v333_v37, %v332_v36  ;;  %v379_v36 = vmul.f32 %v365_v61, %v1161_v16  ;;  %v402_v37 = vadd.f32 %v401_v25, %v370_v10 }
  0xd4   : > { %v335_v39 = vrot.slane %v334_v38, 2 }
  0xd6   : > { %v336_v41 = vadd.f32 %v335_v39, %v334_v38  ;;  %v425_v38 = vrot.slane %v374_v24, 4  ;;  %v380_v39 = vmul.f32 %v365_v61, %v1163_v17 }
  0xd8   : > { %v337_v42 = vrot.slane %v336_v41, 1  ;;  %v461_v63 = vrot.slane %v380_v39, 4 }
  0xda   : > { %v338_v45 = vadd.f32 %v337_v42, %v336_v41  ;;  %v408_v41 = vadd.f32 %v407_v28, %v371_v14  ;;  %v431_v42 = vrot.slane %v375_v26, 4 }
  0xdc   : > { %v340_v46 = vadd.f32 %v339_v43, %v338_v45  ;;  %v381_v43 = vmul.f32 %v365_v61, %v1165_v18  ;;  %v414_v45 = vadd.f32 %v413_v31, %v372_v19 }
  0xde   : > { %vm341_vm1 = vcmp.gt.f32.partialorder %v340_v46, 0.0  ;;  %v342_v48 = vmul.f32 0.2, %v340_v46 }
  0xe0   : > { %v343_v49 = vsel %vm341_vm1, %v340_v46, %v342_v48  ;;  %v437_v46 = vrot.slane %v376_v29, 4  ;;  %v397_v48 = vrot.slane %v396_v33, 2 }
  0xe1   : > { %v348_v51 = vrot.slane %v343_v49, %v347_v47  ;;  %v382_v47 = vmul.f32 %v365_v61, %v1169_v21  ;;  %v420_v49 = vadd.f32 %v419_v34, %v373_v22  ;;  %v467_v61 = vrot.slane %v381_v43, 4 }
  0xe2   : > { %v438_v62 = vadd.f32 %v437_v46, %v376_v29  ;;  %v398_v9 = vadd.f32 %v397_v48, %v396_v33  ;;  %v462_v34 = vadd.f32 %v461_v63, %v380_v39 }
  0xe3   : > { %v349_v52 = vmul.f32 %v348_v51, %v344_v50  ;;  %v443_v50 = vrot.slane %v377_v32, 4  ;;  %v1210_v51 = vstv %s479_s22  ;;  %v421_v10 = vrot.slane %v420_v49, 2 }
  0xe4   : > { %v473_v22 = vrot.slane %v382_v47, 4 }
  0xe5   : > { %v350_v53 = vsel %vm331_vm0, %v349_v52, 0.0  ;;  %v403_v52 = vrot.slane %v402_v37, 2  ;;  %v444_v14 = vadd.f32 %v443_v50, %v377_v32 }
  0xe6   : > { %351 = vadd.xlane.f32.xlu0 %v350_v53  ;;  %v426_v53 = vadd.f32 %v425_v38, %v374_v24  ;;  %v422_v38 = vadd.f32 %v421_v10, %v420_v49 }
  0xe7   : > { %v404_v15 = vadd.f32 %v403_v52, %v402_v37  ;;  %v445_v29 = vrot.slane %v444_v14, 2 }
  0xe8   : > { %v427_v19 = vrot.slane %v426_v53, 2 }
  0xe9   : > { %v405_v33 = vrot.slane %v404_v15, 1 }
 0x16f   : > { %v352_v55 = vpop.xlane.xlu0 %351 }
 0x170   : > { %v354_v56 = vadd.f32 %v353_v54, %v352_v55  ;;  %v449_v54 = vrot.slane %v378_v35, 4  ;;  %v386_v55 = vadd.f32 %v385_v40, %v384_v27  ;;  %v468_v40 = vadd.f32 %v467_v61, %v381_v43 }
 0x172   : > { %v740_v57 = vmul.f32 -1.442695, %v354_v56  ;;  %v409_v56 = vrot.slane %v408_v41, 2  ;;  %v450_v20 = vadd.f32 %v449_v54, %v378_v35  ;;  %v387_v23 = vrot.slane %v386_v55, 1 }
 0x173   : > { %v469_v39 = vrot.slane %v468_v40, 2 }
 0x174   : > { %813 = vpow2.f32 %v740_v57  ;;  %v432_v57 = vadd.f32 %v431_v42, %v375_v26  ;;  %v410_v25 = vadd.f32 %v409_v56, %v408_v41  ;;  %v439_v26 = vrot.slane %v438_v62, 2 }
 0x175   : > { %v428_v42 = vadd.f32 %v427_v19, %v426_v53  ;;  %v451_v32 = vrot.slane %v450_v20, 2  ;;  %v388_v37 = vadd.f32 %v387_v23, %v386_v55  ;;  %v446_v56 = vadd.f32 %v445_v29, %v444_v14 }
 0x176   : > { %v433_v24 = vrot.slane %v432_v57, 2  ;;  %v411_v46 = vrot.slane %v410_v25, 1  ;;  %v440_v52 = vadd.f32 %v439_v26, %v438_v62 }
 0x177   : > { %v429_v49 = vrot.slane %v428_v42, 1  ;;  %v447_v19 = vrot.slane %v446_v56, 1 }
 0x178   : > { %v434_v35 = vadd.f32 %v433_v24, %v432_v57  ;;  %v412_v63 = vadd.f32 %v411_v46, %v410_v25  ;;  %v441_v57 = vrot.slane %v440_v52, 1 }
 0x17a   : > { %v435_v53 = vrot.slane %v434_v35, 1 }
 0x17c   : > { %v436_v25 = vadd.f32 %v435_v53, %v434_v35 }
 0x17e   : > { %v489_v35 = vadd.f32 %v1210_v51, %v436_v25 }
 0x181   : > { %v814_v58 = vpop.eup %813 }
 0x182   : > { %v358_v59 = vadd.f32 1.0, %v814_v58  ;;  %v455_v58 = vrot.slane %v379_v36, 4 }
 0x184   : > { %815 = vrcp.f32 %v358_v59  ;;  %v392_v59 = vadd.f32 %v391_v44, %v390_v30  ;;  %v456_v28 = vadd.f32 %v455_v58, %v379_v36  ;;  %v399_v30 = vrot.slane %v398_v9, 1 }
 0x185   : > { %v474_v44 = vadd.f32 %v473_v22, %v382_v47  ;;  %v463_v36 = vrot.slane %v462_v34, 2  ;;  %v406_v58 = vadd.f32 %v405_v33, %v404_v15  ;;  %v481_v47 = vadd.f32 %v1210_v51, %v388_v37 }
 0x186   : > { %v393_v27 = vrot.slane %v392_v59, 1  ;;  %v457_v48 = vrot.slane %v456_v28, 2  ;;  %v400_v54 = vadd.f32 %v399_v30, %v398_v9  ;;  %v470_v9 = vadd.f32 %v469_v39, %v468_v40 }
 0x187   : > { %v475_v43 = vrot.slane %v474_v44, 2  ;;  %v464_v61 = vadd.f32 %v463_v36, %v462_v34  ;;  %v430_v22 = vadd.f32 %v429_v49, %v428_v42 }
 0x188   : > { %v394_v50 = vadd.f32 %v393_v27, %v392_v59  ;;  %v458_v10 = vadd.f32 %v457_v48, %v456_v28  ;;  %v483_v14 = vadd.f32 %v1210_v51, %v400_v54  ;;  %v485_v28 = vadd.f32 %v1210_v51, %v412_v63 }
 0x189   : > { %v476_v23 = vadd.f32 %v475_v43, %v474_v44  ;;  %v741_v27 = vmul.f32 -1.442695, %v481_v47  ;;  %v465_v26 = vrot.slane %v464_v61, 1  ;;  %v471_v29 = vrot.slane %v470_v9, 1 }
 0x18a   : > { %v482_v59 = vadd.f32 %v1210_v51, %v394_v50  ;;  %v459_v24 = vrot.slane %v458_v10, 1  ;;  %v743_v33 = vmul.f32 -1.442695, %v483_v14  ;;  %v488_v44 = vadd.f32 %v1210_v51, %v430_v22 }
 0x18b   : > { %817 = vpow2.f32 %v741_v27  ;;  %v745_v48 = vmul.f32 -1.442695, %v485_v28  ;;  %v466_v50 = vadd.f32 %v465_v26, %v464_v61  ;;  %v472_v36 = vadd.f32 %v471_v29, %v470_v9 }
 0x18c   : > { %v742_v30 = vmul.f32 -1.442695, %v482_v59  ;;  %v460_v46 = vadd.f32 %v459_v24, %v458_v10 }
 0x18d   : > { %v494_v43 = vadd.f32 %v1210_v51, %v466_v50  ;;  %v495_v53 = vadd.f32 %v1210_v51, %v472_v36 }
 0x18e   : > { %819 = vpow2.f32 %v742_v30  ;;  %v493_v49 = vadd.f32 %v1210_v51, %v460_v46 }
 0x18f   : > { %821 = vpow2.f32 %v743_v33  ;;  %v754_v61 = vmul.f32 -1.442695, %v494_v43  ;;  %v755_v59 = vmul.f32 -1.442695, %v495_v53 }
 0x191   : > { %v816_v60 = vpop.eup %815 }
 0x192   : > { %595 = vperm.xlu1 %811, %v816_v60   ;;  %v415_v60 = vrot.slane %v414_v45, 2 }
 0x194   : > { %v416_v31 = vadd.f32 %v415_v60, %v414_v45  ;;  %v423_v45 = vrot.slane %v422_v38, 1  ;;  %v452_v60 = vadd.f32 %v451_v32, %v450_v20  ;;  %v484_v20 = vadd.f32 %v1210_v51, %v406_v58 }
 0x195   : > { %v477_v32 = vrot.slane %v476_v23, 1  ;;  %v748_v58 = vmul.f32 -1.442695, %v488_v44 }
 0x196   : > { %v417_v41 = vrot.slane %v416_v31, 1  ;;  %v424_v62 = vadd.f32 %v423_v45, %v422_v38  ;;  %v453_v15 = vrot.slane %v452_v60, 1  ;;  %v448_v38 = vadd.f32 %v447_v19, %v446_v56 }
 0x197   : > { %v744_v37 = vmul.f32 -1.442695, %v484_v20  ;;  %v478_v56 = vadd.f32 %v477_v32, %v476_v23 }
 0x198   : > { %v418_v55 = vadd.f32 %v417_v41, %v416_v31  ;;  %v442_v31 = vadd.f32 %v441_v57, %v440_v52  ;;  %v487_v40 = vadd.f32 %v1210_v51, %v424_v62  ;;  %v454_v42 = vadd.f32 %v453_v15, %v452_v60  ;;  %v818_v19 = vpop.eup %817 }
 0x199   : > { %v491_v54 = vadd.f32 %v1210_v51, %v448_v38  ;;  %823 = vpow2.f32 %v744_v37  ;;  %v749_v60 = vmul.f32 -1.442695, %v489_v35  ;;  %v496_v47 = vadd.f32 %v1210_v51, %v478_v56 }
 0x19a   : > { %v486_v34 = vadd.f32 %v1210_v51, %v418_v55  ;;  %v490_v41 = vadd.f32 %v1210_v51, %v442_v31  ;;  %v747_v45 = vmul.f32 -1.442695, %v487_v40  ;;  %v492_v39 = vadd.f32 %v1210_v51, %v454_v42 }
 0x19b   : > { %825 = vpow2.f32 %v745_v48  ;;  %v751_v10 = vmul.f32 -1.442695, %v491_v54  ;;  %v753_v57 = vmul.f32 -1.442695, %v493_v49  ;;  %v756_v62 = vmul.f32 -1.442695, %v496_v47  ;;  %v820_v9 = vpop.eup %819 }
 0x19c   : > { %v746_v52 = vmul.f32 -1.442695, %v486_v34  ;;  %v750_v63 = vmul.f32 -1.442695, %v490_v41  ;;  %v752_v55 = vmul.f32 -1.442695, %v492_v39  ;;  %v822_v14 = vpop.eup %821 }
 0x19d   : > { %v545_v15 = vadd.f32 1.0, %v818_v19  ;;  %v546_v23 = vadd.f32 1.0, %v820_v9  ;;  %v547_v25 = vadd.f32 1.0, %v822_v14 }
 0x19e   : > { %827 = vpow2.f32 %v746_v52 }
 0x19f   : > { %829 = vpow2.f32 %v747_v45 }
 0x1a0   : > { %831 = vpow2.f32 %v748_v58 }
 0x1a1   : > { %833 = vpow2.f32 %v749_v60 }
 0x1a2   : > { %835 = vpow2.f32 %v750_v63 }
 0x1a3   : > { %837 = vpow2.f32 %v751_v10 }
 0x1a4   : > { %839 = vpow2.f32 %v752_v55 }
 0x1a5   : > { %841 = vpow2.f32 %v753_v57 }
 0x1a6   : > { %843 = vpow2.f32 %v754_v61  ;;  %v824_v22 = vpop.eup %823 }
 0x1a7   : > { %845 = vpow2.f32 %v755_v59  ;;  %v548_v28 = vadd.f32 1.0, %v824_v22 }
 0x1a8   : > { %847 = vpow2.f32 %v756_v62  ;;  %v826_v51 = vpop.eup %825 }
 0x1a9   : > { %v549_v31 = vadd.f32 1.0, %v826_v51  ;;  %849 = vrcp.f32 %v545_v15 }
 0x1aa   : > { %851 = vrcp.f32 %v546_v23 }
 0x1ab   : > { %v828_v20 = vpop.eup %827  ;;  %853 = vrcp.f32 %v547_v25 }
 0x1ac   : > { %v830_v24 = vpop.eup %829  ;;  %v550_v34 = vadd.f32 1.0, %v828_v20  ;;  %855 = vrcp.f32 %v548_v28 }
 0x1ad   : > { %v832_v27 = vpop.eup %831  ;;  %v551_v38 = vadd.f32 1.0, %v830_v24  ;;  %857 = vrcp.f32 %v549_v31 }
 0x1ae   : > { %v834_v26 = vpop.eup %833  ;;  %v552_v40 = vadd.f32 1.0, %v832_v27  ;;  %859 = vrcp.f32 %v550_v34 }
 0x1af   : > { %v836_v30 = vpop.eup %835  ;;  %v553_v42 = vadd.f32 1.0, %v834_v26  ;;  %861 = vrcp.f32 %v551_v38 }
 0x1b0   : > { %v838_v29 = vpop.eup %837  ;;  %v554_v44 = vadd.f32 1.0, %v836_v30  ;;  %863 = vrcp.f32 %v552_v40 }
 0x1b1   : > { %v840_v33 = vpop.eup %839  ;;  %v555_v46 = vadd.f32 1.0, %v838_v29  ;;  %865 = vrcp.f32 %v553_v42 }
 0x1b2   : > { %v842_v32 = vpop.eup %841  ;;  %v556_v48 = vadd.f32 1.0, %v840_v33  ;;  %867 = vrcp.f32 %v554_v44 }
 0x1b3   : > { %v844_v37 = vpop.eup %843  ;;  %v557_v41 = vadd.f32 1.0, %v842_v32  ;;  %869 = vrcp.f32 %v555_v46 }
 0x1b4   : > { %v846_v35 = vpop.eup %845  ;;  %v558_v52 = vadd.f32 1.0, %v844_v37  ;;  %871 = vrcp.f32 %v556_v48 }
 0x1b5   : > { %v848_v50 = vpop.eup %847  ;;  %v559_v36 = vadd.f32 1.0, %v846_v35  ;;  %873 = vrcp.f32 %v557_v41 }
 0x1b6   : > { %v560_v54 = vadd.f32 1.0, %v848_v50  ;;  %v850_v45 = vpop.eup %849  ;;  %875 = vrcp.f32 %v558_v52 }
 0x1b7   : > { %v852_v56 = vpop.eup %851  ;;  %877 = vrcp.f32 %v559_v36 }
 0x1b8   : > { %v854_v39 = vpop.eup %853  ;;  %879 = vrcp.f32 %v560_v54 }
 0x1b9   : > { %v856_v58 = vpop.eup %855 }
 0x1ba   : > { %v858_v49 = vpop.eup %857 }
 0x1bb   : > { %v860_v60 = vpop.eup %859 }
 0x1bc   : > { %v862_v43 = vpop.eup %861 }
 0x1bd   : > { %v864_v63 = vpop.eup %863 }
 0x1be   : > { %v866_v53 = vpop.eup %865 }
 0x1bf   : > { %v868_v10 = vpop.eup %867 }
 0x1c0   : > { %v870_v47 = vpop.eup %869 }
 0x1c1   : > { %v872_v55 = vpop.eup %871 }
 0x1c2   : > { %v874_v57 = vpop.eup %873 }
 0x1c3   : > { %v876_v59 = vpop.eup %875 }
 0x1c4   : > { %v878_v22 = vpop.eup %877 }
 0x1c5   : > { %v880_v25 = vpop.eup %879 }
 0x20d   : > { %v596_v61 = vpop.permute.xlu1 %595 }
 0x20e   : > { %v598_v62 = vadd.f32 %v850_v45, %v596_v61  ;;  %v599_v19 = vadd.f32 %v852_v56, %v596_v61  ;;  %v600_v9 = vadd.f32 %v854_v39, %v596_v61  ;;  %v601_v14 = vadd.f32 %v856_v58, %v596_v61 }
 0x20f   : > { %v602_v15 = vadd.f32 %v858_v49, %v596_v61  ;;  %v603_v51 = vadd.f32 %v860_v60, %v596_v61  ;;  %v604_v23 = vadd.f32 %v862_v43, %v596_v61  ;;  %v605_v20 = vadd.f32 %v864_v63, %v596_v61 }
 0x210   : > { %v606_v24 = vadd.f32 %v866_v53, %v596_v61  ;;  %v607_v28 = vadd.f32 %v868_v10, %v596_v61  ;;  %v608_v27 = vadd.f32 %v870_v47, %v596_v61  ;;  %v609_v31 = vadd.f32 %v872_v55, %v596_v61 }
 0x211   : > { %v610_v26 = vadd.f32 %v874_v57, %v596_v61  ;;  %v611_v34 = vadd.f32 %v876_v59, %v596_v61  ;;  %v612_v30 = vadd.f32 %v878_v22, %v596_v61  ;;  %v613_v38 = vadd.f32 %v880_v25, %v596_v61 }
 0x212   : > { %v614_v29 = vmul.f32 %v598_v62, %v1129_v0  ;;  %v615_v40 = vmul.f32 %v599_v19, %v1131_v1  ;;  %v616_v33 = vmul.f32 %v600_v9, %v1133_v2  ;;  %v617_v42 = vmul.f32 %v601_v14, %v1135_v3 }
 0x213   : > { %v618_v32 = vmul.f32 %v602_v15, %v1137_v4  ;;  %v619_v0 = vmul.f32 %v603_v51, %v1139_v5  ;;  %v620_v1 = vmul.f32 %v604_v23, %v1141_v6  ;;  %v621_v2 = vmul.f32 %v605_v20, %v1143_v7 }
 0x214   : > { %v622_v3 = vmul.f32 %v606_v24, %v1145_v8  ;;  %v623_v44 = vmul.f32 %v607_v28, %v1151_v11  ;;  %v624_v37 = vmul.f32 %v608_v27, %v1153_v12  ;;  %v625_v46 = vmul.f32 %v609_v31, %v1155_v13  ;;  %630 = vst [vmem:[%s1235_s24] sm:$0xff] %v614_v29 }
 0x215   : > { %631 = vst [vmem:[%s1235_s24 + $0x8] sm:$0xff] %v615_v40  ;;  %632 = vst [vmem:[%s1235_s24 + $0x10] sm:$0xff] %v616_v33  ;;  %v626_v4 = vmul.f32 %v610_v26, %v1161_v16  ;;  %v627_v5 = vmul.f32 %v611_v34, %v1163_v17  ;;  %v628_v6 = vmul.f32 %v612_v30, %v1165_v18 }
 0x216   : > { %633 = vst [vmem:[%s1235_s24 + $0x18] sm:$0xff] %v617_v42  ;;  %v629_v7 = vmul.f32 %v613_v38, %v1169_v21  ;;  %634 = vst [vmem:[%s1235_s24 + $0x20] sm:$0xff] %v618_v32 }
 0x217   : > { %635 = vst [vmem:[%s1235_s24 + $0x28] sm:$0xff] %v619_v0  ;;  %636 = vst [vmem:[%s1235_s24 + $0x30] sm:$0xff] %v620_v1 }
 0x218   : > { %637 = vst [vmem:[%s1235_s24 + $0x38] sm:$0xff] %v621_v2  ;;  %638 = vst [vmem:[%s1235_s24 + $0x40] sm:$0xff] %v622_v3 }
 0x219   : > { %639 = vst [vmem:[%s1235_s24 + $0x48] sm:$0xff] %v623_v44  ;;  %640 = vst [vmem:[%s1235_s24 + $0x50] sm:$0xff] %v624_v37 }
 0x21a   : > { %641 = vst [vmem:[%s1235_s24 + $0x58] sm:$0xff] %v625_v46  ;;  %642 = vst [vmem:[%s1235_s24 + $0x60] sm:$0xff] %v626_v4 }
 0x21b   : > { %643 = vst [vmem:[%s1235_s24 + $0x68] sm:$0xff] %v627_v5  ;;  %644 = vst [vmem:[%s1235_s24 + $0x70] sm:$0xff] %v628_v6 }
 0x21c   : > { %645 = vst [vmem:[%s1235_s24 + $0x78] sm:$0xff] %v629_v7 }
 0x21d   : > { %922 = shalt.err (!%p919_p10)
}
 0x21e   : > { %s923_s16 = scalar_lea.hbm %s1261_s21, 2048  ;;  %s927_s20 = scalar_lea.hbm %s1319_s7, 4096 }
 0x21f   : > { %p924_p2 = scmp.ne.s32.totalorder %s1261_s21, %s923_s16  ;;  %p928_p7 = scmp.lt.s32.totalorder %s1261_s21, %s1319_s7 }
 0x220   : > { %p929_p0 = scmp.lt.s32.totalorder %s927_s20, %s923_s16 }
 0x221   : > { %p925_p4 = pnand %p924_p2, %p1330_p12 }
 0x222   : > { %p930_p6 = por %p929_p0, %p928_p7 }
 0x223   : > { %p926_p9 = pneg %p925_p4 }
 0x225   : > { %p931_p11 = pnand %p930_p6, %p926_p9 }
 0x227   : > { %934 = shalt.err (!%p931_p11)
}
 0x228   : > { %766 = dma.vmem_to_hbm [thread:$0]  (%p1330_p12), %s1263_s13, 2048, %s1261_s21, %s647_s23  }
 0x229 PF: > { %s673_s24 = sand.u32 1, %s961_s26   ;;  %p1331_p13 = scmp.ne.s32.totalorder %s1325_s15, 0 }
 0x22a   : > { %p1332_p1 = scmp.ge.s32.totalorder %s973_s29, 2  ;;  %s674_s6 = scalar_lea.sflag [#allocation5], %s673_s24 }
 0x22c   : > { %p773_p3 = pnand %p1332_p1, %p1331_p13 }
 0x22e   : > { %p774_p5 = pneg %p773_p3 }
 0x230   : > { %956 = dma.done.wait (%p774_p5), %s674_s6, 2048  }
 0x231   : > { %958 = vsyncadd (%p774_p5), %s674_s6, 4294965248  ;;  %p21_p8 = scmp.ge.s32.totalorder %s1046_s8, 4   ;;  %s1333_s26 = smov %s965_s27 }
 0x232   : > { %s1334_s27 = smov %s969_s28  ;;  %s1335_s28 = smov %s1058_s11 }
 0x233   : > { %s1336_s29 = smov %s1046_s8  ;;  %23 = sbr.rel (!%p21_p8) target bundleno = 7 (0x7), region = 93 }
 0x238   :  { %679 = vsyncpa [#allocation4], 1 }
 0x239   :  { %681 = vsyncpa [#allocation4 + $0x1], 1 }
 0x23a   :  { %682 = vsyncpa [#allocation5], 1 }
 0x23b   :  { %684 = vsyncpa [#allocation5 + $0x1], 1 }

</bundles_post_ra>
